<compile_context>
chip_gen: v5e
topology: v5e:2x2
jax: 0.10.0
libtpu: 0.0.40
codegen_flags: <defaults>
</compile_context>

<pallas_src>
import functools

import jax
import jax.numpy as jnp
from jax import lax
from jax.experimental import pallas as pl
from jax.experimental.pallas import tpu as pltpu

_LANES = 128
_SUBLANES = 8
_SUB_ROWS = 64          # rows per in-kernel compute chunk (64x128 f32 = 8 vregs/stream)
_PAD_LOGIT = -1e4       # finite: exp(-1e4) == 0 exactly, so padded loss == 0


def _resident_suffix_ndims(full_shape, arrs, max_suffix_rows=_SUB_ROWS):
    """Smallest trailing-dim count k so every weight array broadcasts
    (right-aligned) over full_shape[-k:], prod(full_shape[-k:]) % 128 == 0 and
    the suffix row count divides the 64-row compute chunk.  None -> stream."""
    nd = len(full_shape)
    if nd == 0:
        return None
    k_min = 1
    for a in arrs:
        if a.ndim > nd:
            return None
        for i in range(1, a.ndim + 1):
            if a.shape[-i] != 1 and a.shape[-i] != full_shape[-i]:
                return None
        k_min = max(k_min, a.ndim)
    size = 1
    for i in range(1, nd + 1):
        size *= int(full_shape[-i])
        if i < k_min or size % _LANES != 0:
            continue
        rows = size // _LANES
        if rows > max_suffix_rows:
            return None
        if max_suffix_rows % rows == 0:
            return i
    return None


def _bce_partial_kernel(*refs, smooth, has_w, has_p, wp_resident, s_rows,
                        sub_rows, block_rows, num_blocks, valid_rows_last,
                        mask_limit_last):
    """Per-block partial sums of BCE-with-logits losses into an (8,128) tile.

    Stable math (matches torch.nn.functional.binary_cross_entropy_with_logits):
      no pos_weight:   loss = max(x,0) - x*y + log1p(exp(-|x|))
      with pos_weight: loss = p * y * softplus(-x) + (1-y) * softplus(x)
    then loss *= weight (if provided).
    """
    x_ref, y_ref = refs[0], refs[1]
    idx = 2
    w_ref = p_ref = None
    if has_w:
        w_ref = refs[idx]
        idx += 1
    if has_p:
        p_ref = refs[idx]
        idx += 1
    out_ref = refs[idx]

    def wp_chunk(ref, row0, nrows):
        if wp_resident:
            # Tiny (s_rows,128) tile resident in VMEM; row0 is always a multiple
            # of s_rows, so the repeating pattern is position-independent here.
            tile = ref[...].astype(jnp.float32)
            reps = -(-nrows // s_rows)
            full = jnp.broadcast_to(tile[None], (reps, s_rows, _LANES))
            full = full.reshape(reps * s_rows, _LANES)
            return full[:nrows] if reps * s_rows != nrows else full
        return ref[pl.ds(row0, nrows), :].astype(jnp.float32)

    def chunk_partial(row0, nrows, mask_limit):
        x = x_ref[pl.ds(row0, nrows), :].astype(jnp.float32)
        y = y_ref[pl.ds(row0, nrows), :].astype(jnp.float32)
        if smooth != 0.0:
            y = jnp.clip(y, smooth, 1.0 - smooth)
        if has_p:
            p = wp_chunk(p_ref, row0, nrows)
            sp_pos = jnp.maximum(x, 0.0) + jnp.log1p(jnp.exp(-jnp.abs(x)))
            sp_neg = sp_pos - x                       # softplus(-x), no extra EUP push
            loss = p * y * sp_neg + (1.0 - y) * sp_pos
        else:
            # Simplified stable form: 1 exp + 1 log1p per element.
            loss = jnp.maximum(x, 0.0) - x * y + jnp.log1p(jnp.exp(-jnp.abs(x)))
        if has_w:
            loss = loss * wp_chunk(w_ref, row0, nrows)
        if mask_limit is not None:
            # Only reached for the last block when smooth != 0 AND the size was
            # unaligned.  Block-local flat index: <= block_rows*128 -> int32-safe.
            row = lax.broadcasted_iota(jnp.int32, (nrows, _LANES), 0)
            lane = lax.broadcasted_iota(jnp.int32, (nrows, _LANES), 1)
            flat = (row0 + row) * _LANES + lane
            loss = jnp.where(flat < mask_limit, loss, 0.0)
        # (nrows,128) -> (nrows//8,8,128) -> (8,128): pure VPU vreg adds.
        return jnp.sum(loss.reshape(nrows // _SUBLANES, _SUBLANES, _LANES), axis=0)

    def block_partial(valid_rows, mask_limit):
        # Strip-mined reduce: never materializes the full (block_rows,128) loss.
        n_full = valid_rows // sub_rows
        rem = valid_rows - n_full * sub_rows
        acc = jnp.zeros((_SUBLANES, _LANES), jnp.float32)
        if n_full > 0:
            def body(c, a):
                row0 = pl.multiple_of(c * sub_rows, sub_rows)
                return a + chunk_partial(row0, sub_rows, mask_limit)
            acc = lax.fori_loop(0, n_full, body, acc)
        if rem > 0:
            acc = acc + chunk_partial(n_full * sub_rows, rem, mask_limit)
        return acc

    if num_blocks == 1:
        out_ref[...] = block_partial(valid_rows_last, mask_limit_last)
    elif valid_rows_last == block_rows and mask_limit_last is None:
        out_ref[...] = block_partial(block_rows, None)
    else:
        # Duplicated write paths so non-last blocks carry zero tail overhead.
        not_last = pl.program_id(0) < num_blocks - 1

        @pl.when(not_last)
        def _():
            out_ref[...] = block_partial(block_rows, None)

        @pl.when(jnp.logical_not(not_last))
        def _():
            out_ref[...] = block_partial(valid_rows_last, mask_limit_last)


def bce_with_logits_loss(logits, target, weight=None, pos_weight=None,
                         reduction="mean", smooth=0.0, max_block_rows=2048):
    """Pallas BCEWithLogitsLoss matching the PyTorch module semantics."""
    if reduction not in ("mean", "sum"):
        # TODO(synk): reduction='none' needs a full elementwise-output kernel;
        # only 'mean' / 'sum' (the module default is 'mean') are wired through.
        raise NotImplementedError("reduction='none' not implemented")

    orig_dtype = logits.dtype
    full_shape = logits.shape
    if target.shape != full_shape:
        target = jnp.broadcast_to(target, full_shape)
    n_elem = int(logits.size)

    has_w = weight is not None
    has_p = pos_weight is not None
    if has_w:
        weight = jnp.asarray(weight)
    if has_p:
        pos_weight = jnp.asarray(pos_weight)

    # --- weight / pos_weight handling: VMEM-resident suffix vs streamed ------
    wp_resident = False
    s_rows = 0
    res_arrs = []
    if has_w or has_p:
        arrs = [a for a in (weight, pos_weight) if a is not None]
        k = _resident_suffix_ndims(full_shape, arrs)
        if k is not None:
            wp_resident = True
            suffix = full_shape[len(full_shape) - k:]
            s = 1
            for d in suffix:
                s *= int(d)
            sr = s // _LANES

            def _res(a):
                a2 = jnp.broadcast_to(a, suffix).astype(jnp.float32)
                a2 = a2.reshape(sr, _LANES)
                if sr < _SUBLANES:          # sr in {1,2,4}: tile up to 8 rows
                    a2 = jnp.tile(a2, (_SUBLANES // sr, 1))
                return a2

            s_rows = max(sr, _SUBLANES)
            if has_w:
                res_arrs.append(_res(weight))
            if has_p:
                res_arrs.append(_res(pos_weight))

    # --- HBM streams (logits, targets, and only-if-needed full w/p) ----------
    stream_arrs = [logits, target]
    stream_fills = [_PAD_LOGIT, 0.0]
    if (has_w or has_p) and not wp_resident:
        if has_w:
            stream_arrs.append(jnp.broadcast_to(weight, full_shape))
            stream_fills.append(0.0)
        if has_p:
            stream_arrs.append(jnp.broadcast_to(pos_weight, full_shape))
            stream_fills.append(1.0)

    # Pad only to the packed-sublane granule (1024 elems f32, 2048 bf16, ...);
    # aligned inputs (the common case) are reshaped with no copy at all.
    min_item = min(int(a.dtype.itemsize) for a in stream_arrs)
    pack = max(1, 4 // min_item)
    row_granule = _SUBLANES * pack
    granule = _LANES * row_granule
    pad = (-n_elem) % granule
    rows = (n_elem + pad) // _LANES

    def _prep(a, fill):
        a = a.reshape(-1)
        if pad:
            a = jnp.pad(a, (0, pad), constant_values=fill)
        return a.reshape(rows, _LANES)

    streams = [_prep(a, f) for a, f in zip(stream_arrs, stream_fills)]

    # --- block sizing ---------------------------------------------------------
    if rows <= max_block_rows:
        block_rows = rows               # single full block (full-dim block is legal)
        num_blocks = 1
    else:
        block_rows = max(_SUB_ROWS, (int(max_block_rows) // _SUB_ROWS) * _SUB_ROWS)
        num_blocks = pl.cdiv(rows, block_rows)
    valid_rows_last = rows - (num_blocks - 1) * block_rows
    last_start_elems = (num_blocks - 1) * block_rows * _LANES
    # Element mask is only needed when label smoothing makes padded-element loss
    # nonzero; otherwise the (-1e4, 0) pad gives an exact-zero contribution.
    mask_limit_last = (n_elem - last_start_elems) if (pad and smooth != 0.0) else None

    tile_spec = pl.BlockSpec((block_rows, _LANES), lambda i: (i, 0))
    in_specs = [tile_spec] * len(streams)
    ins = list(streams)
    if wp_resident:
        res_spec = pl.BlockSpec((s_rows, _LANES), lambda i: (0, 0))  # fetched once
        in_specs += [res_spec] * len(res_arrs)
        ins += res_arrs

    kernel = functools.partial(
        _bce_partial_kernel,
        smooth=float(smooth), has_w=has_w, has_p=has_p,
        wp_resident=wp_resident, s_rows=s_rows, sub_rows=_SUB_ROWS,
        block_rows=block_rows, num_blocks=num_blocks,
        valid_rows_last=valid_rows_last, mask_limit_last=mask_limit_last)

    partials = pl.pallas_call(
        kernel,
        out_shape=jax.ShapeDtypeStruct((num_blocks, _SUBLANES, _LANES),
                                       jnp.float32),
        grid_spec=pltpu.PrefetchScalarGridSpec(
            num_scalar_prefetch=0,
            grid=(num_blocks,),
            in_specs=in_specs,
            out_specs=pl.BlockSpec((None, _SUBLANES, _LANES),
                                   lambda i: (i, 0, 0)),
        ),
        # Independent per-block output tiles -> fully parallel grid (lets v7x
        # shard blocks across both TensorCores; near-neutral on v5e/v6e).
        compiler_params=pltpu.CompilerParams(
            dimension_semantics=("parallel",)),
    )(*ins)

    total = jnp.sum(partials)
    out = total / jnp.float32(n_elem) if reduction == "mean" else total
    # Matches PyTorch: the reduced loss is returned in the input dtype
    # (truncates for bf16 inputs by design).
    return out.astype(orig_dtype)


def _reference(logits, target, weight=None, pos_weight=None,
               reduction="mean", smooth=0.0):
    x = logits.astype(jnp.float32)
    y = target.astype(jnp.float32)
    if smooth != 0:
        y = jnp.clip(y, smooth, 1.0 - smooth)
    w = 1.0 if weight is None else weight.astype(jnp.float32)
    p = 1.0 if pos_weight is None else pos_weight.astype(jnp.float32)
    loss = w * (p * y * jax.nn.softplus(-x) + (1.0 - y) * jax.nn.softplus(x))
    return jnp.mean(loss) if reduction == "mean" else jnp.sum(loss)


if __name__ == "__main__":
    key = jax.random.PRNGKey(0)
    k1, k2, k3, k4 = jax.random.split(key, 4)

    # NCHW logits / targets, as the loss is typically applied to conv outputs.
    x = jax.random.normal(k1, (2, 4, 16, 16), dtype=jnp.float32) * 3.0
    y = (jax.random.uniform(k2, (2, 4, 16, 16)) > 0.5).astype(jnp.float32)

    # Module defaults: weight=None, pos_weight=None, reduction='mean', smooth=0.
    out = jax.block_until_ready(bce_with_logits_loss(x, y))
    ref = _reference(x, y)
    assert jnp.allclose(out, ref, rtol=1e-4, atol=1e-5), (out, ref)

    # smooth != 0 path.
    out_s = jax.block_until_ready(bce_with_logits_loss(x, y, smooth=0.1))
    ref_s = _reference(x, y, smooth=0.1)
    assert jnp.allclose(out_s, ref_s, rtol=1e-4, atol=1e-5), (out_s, ref_s)

    # weight + pos_weight (broadcast) + 'sum': exercises the VMEM-resident
    # suffix path (no full-size broadcast is streamed).
    w = jax.random.uniform(k3, (4, 16, 16), dtype=jnp.float32) + 0.5
    p = jax.random.uniform(k4, (16,), dtype=jnp.float32) * 2.0 + 0.5
    out_w = jax.block_until_ready(
        bce_with_logits_loss(x, y, weight=w, pos_weight=p, reduction="sum"))
    ref_w = _reference(x, y, weight=w, pos_weight=p, reduction="sum")
    assert jnp.allclose(out_w, ref_w, rtol=1e-4, atol=1e-3), (out_w, ref_w)

    # Non-128-multiple size: small host pad with exact-zero padded loss.
    x2 = jax.random.normal(k1, (3, 5, 7), dtype=jnp.float32)
    y2 = (jax.random.uniform(k2, (3, 5, 7)) > 0.5).astype(jnp.float32)
    out_m = jax.block_until_ready(bce_with_logits_loss(x2, y2))
    ref_m = _reference(x2, y2)
    assert jnp.allclose(out_m, ref_m, rtol=1e-4, atol=1e-5), (out_m, ref_m)

    # Multi-block grid with a partial last block (no padding needed).
    x3 = jax.random.normal(k1, (2, 4, 192, 192), dtype=jnp.float32) * 2.0
    y3 = (jax.random.uniform(k2, (2, 4, 192, 192)) > 0.5).astype(jnp.float32)
    out_b = jax.block_until_ready(bce_with_logits_loss(x3, y3))
    ref_b = _reference(x3, y3)
    assert jnp.allclose(out_b, ref_b, rtol=5e-4, atol=1e-5), (out_b, ref_b)

    # Multi-block + unaligned size + smoothing + non-suffix-alignable pos_weight:
    # exercises the last-block tail mask and the streamed-weight fallback.
    x4 = jax.random.normal(k3, (2, 4, 194, 194), dtype=jnp.float32)
    y4 = (jax.random.uniform(k4, (2, 4, 194, 194)) > 0.5).astype(jnp.float32)
    p4 = jnp.asarray([0.5, 1.0, 1.5, 2.0], dtype=jnp.float32).reshape(4, 1, 1)
    out_t = jax.block_until_ready(
        bce_with_logits_loss(x4, y4, pos_weight=p4, smooth=0.05))
    ref_t = _reference(x4, y4, pos_weight=p4, smooth=0.05)
    assert jnp.allclose(out_t, ref_t, rtol=5e-4, atol=1e-5), (out_t, ref_t)

    # bf16 logits: packed-sublane stream, row granule bumps to 16.
    xb = (jax.random.normal(k1, (2, 4, 16, 16)) * 3.0).astype(jnp.bfloat16)
    yb = (jax.random.uniform(k2, (2, 4, 16, 16)) > 0.5).astype(jnp.float32)
    out_bf = jax.block_until_ready(bce_with_logits_loss(xb, yb))
    ref_bf = _reference(xb, yb)
    assert jnp.allclose(out_bf.astype(jnp.float32), ref_bf,
                        rtol=2e-2, atol=2e-2), (out_bf, ref_bf)

    print("KERNEL_OK")
</pallas_src>

<mosaic_0001>
module attributes {stable_mosaic.version = 11 : i64} {
  func.func @_bce_partial_kernel(%arg0: i32, %arg1: memref<16x128xf32, #tpu.memory_space<vmem>>, %arg2: memref<16x128xf32, #tpu.memory_space<vmem>>, %arg3: memref<1x8x128xf32, #tpu.memory_space<vmem>>) attributes {dimension_semantics = [#tpu.dimension_semantics<parallel>], iteration_bounds = array<i64: 1>, scalar_prefetch = 0 : i64, scratch_operands = 0 : i64, tpu.core_type = #tpu.core_type<tc>, window_params = [{transform_indices = @transform_0, window_bounds = array<i64: 16, 128>}, {transform_indices = @transform_1, window_bounds = array<i64: 16, 128>}, {transform_indices = @transform_2, window_bounds = array<i64: 1, 8, 128>}]} {
    %cst = arith.constant 0.000000e+00 : f32
    %0 = vector.broadcast %cst : f32 to vector<8x128xf32>
    %c0 = arith.constant 0 : index
    %c0_0 = arith.constant 0 : index
    %1 = vector.load %arg1[%c0, %c0_0] : memref<16x128xf32, #tpu.memory_space<vmem>>, vector<16x128xf32>
    %c0_1 = arith.constant 0 : index
    %c0_2 = arith.constant 0 : index
    %2 = vector.load %arg2[%c0_1, %c0_2] : memref<16x128xf32, #tpu.memory_space<vmem>>, vector<16x128xf32>
    %cst_3 = arith.constant 0.000000e+00 : f32
    %3 = vector.broadcast %cst_3 : f32 to vector<16x128xf32>
    %4 = arith.maximumf %1, %3 : vector<16x128xf32>
    %5 = arith.mulf %1, %2 : vector<16x128xf32>
    %6 = arith.subf %4, %5 : vector<16x128xf32>
    %7 = math.absf %1 : vector<16x128xf32>
    %cst_4 = arith.constant 0.000000e+00 : f32
    %8 = vector.broadcast %cst_4 : f32 to vector<16x128xf32>
    %9 = arith.subf %8, %7 : vector<16x128xf32>
    %10 = math.exp %9 : vector<16x128xf32>
    %11 = math.log1p %10 : vector<16x128xf32>
    %12 = arith.addf %6, %11 : vector<16x128xf32>
    %13 = vector.shape_cast %12 : vector<16x128xf32> to vector<2x8x128xf32>
    %cst_5 = arith.constant dense<0.000000e+00> : vector<8x128xf32>
    %14 = vector.multi_reduction <add>, %13, %cst_5 [0] : vector<2x8x128xf32> to vector<8x128xf32>
    %15 = arith.addf %0, %14 : vector<8x128xf32>
    %c0_6 = arith.constant 0 : index
    %c0_7 = arith.constant 0 : index
    %c0_8 = arith.constant 0 : index
    %16 = vector.load %arg3[%c0_6, %c0_7, %c0_8] : memref<1x8x128xf32, #tpu.memory_space<vmem>>, vector<1x8x128xf32>
    %17 = vector.shape_cast %16 : vector<1x8x128xf32> to vector<8x128xf32>
    %18 = vector.shape_cast %15 : vector<8x128xf32> to vector<1x8x128xf32>
    tpu.vector_store %arg3[%c0_6, %c0_7, %c0_8], %18 {strides = array<i32>} : memref<1x8x128xf32, #tpu.memory_space<vmem>>, vector<1x8x128xf32>,
    return
  }
  func.func @transform_0(%arg0: i32) -> (i32, i32) {
    %c0_i32 = arith.constant 0 : i32
    %c0_i32_0 = arith.constant 0 : i32
    return %arg0, %c0_i32 : i32, i32
  }
  func.func @transform_1(%arg0: i32) -> (i32, i32) {
    %c0_i32 = arith.constant 0 : i32
    %c0_i32_0 = arith.constant 0 : i32
    return %arg0, %c0_i32 : i32, i32
  }
  func.func @transform_2(%arg0: i32) -> (i32, i32, i32) {
    %c0_i32 = arith.constant 0 : i32
    %c0_i32_0 = arith.constant 0 : i32
    %c0_i32_1 = arith.constant 0 : i32
    return %arg0, %c0_i32, %c0_i32_0 : i32, i32, i32
  }
}

</mosaic_0001>

<bundles_post_ra>
// kernel: tpu_custom_call.1
= control target key start
LH: loop header
LB: loop body
LE: loop exit
PB: predicated region body
PF: predicated region fallthrough
CT: control target
= control target key end

     0   :  { %7 = vsyncpa [#allocation3], 0  ;;  %s223_s0 = inlined_call_operand.hbm [shape: f32[16,128], index: 0, kind: input, shape index: {}]   ;;  %s224_s1 = inlined_call_operand.hbm [shape: f32[16,128], index: 1, kind: input, shape index: {}]   ;;  %s225_s2 = inlined_call_operand.hbm [shape: f32[1,8,128], index: 2, kind: output, shape index: {}]  }
   0x1   :  { %8 = vsyncpa [#allocation6], 0 }
   0x2   :  { %9 = vsyncpa [#allocation4], 0  ;;  %s14_s11 = sshll.u32 %s223_s0, 4  ;;  %s194_s12 = smov [#allocation2]   ;;  %s15_s11 = int_to_ptr.hbm [resolvable:$true] %s14_s11 }
   0x3   :  { %s16_s13 = sshll.u32 %s194_s12, 4  ;;  %s27_s16 = sshll.u32 %s224_s1, 4  ;;  %s17_s13 = int_to_ptr.vmem [resolvable:$true] %s16_s13  ;;  %s28_s16 = int_to_ptr.hbm [resolvable:$true] %s27_s16 }
   0x4   :  { %s195_s17 = smov 128   ;;  %s196_s18 = smov 8  }
   0x5   :  { %22 = dma.hbm_to_vmem [thread:$0]  %s15_s11, 256, %s17_s13, [#allocation3], %s195_s17, %s195_s17, %s196_s18  }
   0x6   :  { %s197_s19 = smov [#allocation5]  }
   0x7   :  { %s29_s20 = sshll.u32 %s197_s19, 4  ;;  %s30_s20 = int_to_ptr.vmem [resolvable:$true] %s29_s20 }
   0x8   :  { %35 = dma.hbm_to_vmem [thread:$0]  %s28_s16, 256, %s30_s20, [#allocation6], %s195_s17, %s195_s17, %s196_s18  }
   0x9   :  { %188 = dma.done.wait [#allocation3], 256  }
   0xa   :  { %189 = vsyncadd [#allocation3], 4294967040 }
   0xb   :  { %190 = dma.done.wait [#allocation6], 256  }
   0xc   :  { %191 = vsyncadd [#allocation6], 4294967040  ;;  %v44_v0 = vld [vmem:[#allocation2] sm:$0xff]  ;;  %v45_v1 = vld [vmem:[#allocation2 + $0x8] sm:$0xff]  ;;  %s198_s0 = smov [#allocation7]   ;;  %s92_s23 = sshll.u32 %s225_s2, 4  ;;  %s93_s23 = int_to_ptr.hbm [resolvable:$true] %s92_s23 }
   0xd   :  { %v54_v2 = vand.u32 2147483647, %v44_v0  ;;  %v55_v3 = vand.u32 2147483647, %v45_v1  ;;  %v46_v12 = vld [vmem:[#allocation5] sm:$0xff]  ;;  %v47_v15 = vld [vmem:[#allocation5 + $0x8] sm:$0xff] }
   0xe   :  { %v48_v17 = vmax.f32 %v44_v0, 0.0  ;;  %v50_v18 = vmul.f32 %v46_v12, %v44_v0  ;;  %v49_v21 = vmax.f32 %v45_v1, 0.0  ;;  %v51_v22 = vmul.f32 %v47_v15, %v45_v1  ;;  %s90_s1 = sshll.u32 %s198_s0, 4  ;;  %s91_s1 = int_to_ptr.vmem [resolvable:$true] %s90_s1 }
   0xf   :  { %v56_v4 = vsub.f32 0.0, %v54_v2  ;;  %v57_v5 = vsub.f32 0.0, %v55_v3 }
  0x10   :  { %v52_v26 = vsub.f32 %v48_v17, %v50_v18  ;;  %v53_v29 = vsub.f32 %v49_v21, %v51_v22 }
  0x11   :  { %v58_v6 = vmul.f32 1.442695, %v56_v4  ;;  %v60_v7 = vmul.f32 1.442695, %v57_v5 }
  0x13   :  { %108 = vpow2.f32 %v58_v6 }
  0x14   :  { %110 = vpow2.f32 %v60_v7 }
  0x19   :  { %v109_v8 = vpop.eup %108 }
  0x1a   :  { %v111_v9 = vpop.eup %110  ;;  %v62_v10 = vadd.f32 1.0, %v109_v8  ;;  %v65_v11 = vmul.f32 -0.5, %v109_v8  ;;  %v68_v19 = vand.u32 2147483647, %v109_v8 }
  0x1b   :  { %v71_v13 = vadd.f32 1.0, %v111_v9  ;;  %v74_v14 = vmul.f32 -0.5, %v111_v9  ;;  %v77_v23 = vand.u32 2147483647, %v111_v9 }
  0x1c   :  { %112 = vlog2.f32 %v62_v10  ;;  %v66_v16 = vadd.f32 1.0, %v65_v11  ;;  %vm69_vm0 = vcmp.lt.f32.partialorder %v68_v19, 0.0004427343 }
  0x1d   :  { %114 = vlog2.f32 %v71_v13  ;;  %v75_v20 = vadd.f32 1.0, %v74_v14  ;;  %vm78_vm1 = vcmp.lt.f32.partialorder %v77_v23, 0.0004427343 }
  0x1e   :  { %v67_v24 = vmul.f32 %v109_v8, %v66_v16 }
  0x1f   :  { %v76_v27 = vmul.f32 %v111_v9, %v75_v20 }
  0x22   :  { %v113_v25 = vpop.eup %112 }
  0x23   :  { %v115_v28 = vpop.eup %114  ;;  %v64_v30 = vmul.f32 0.6931472, %v113_v25 }
  0x24   :  { %v73_v31 = vmul.f32 0.6931472, %v115_v28 }
  0x25   :  { %v70_v32 = vsel %vm69_vm0, %v67_v24, %v64_v30 }
  0x26   :  { %v79_v33 = vsel %vm78_vm1, %v76_v27, %v73_v31  ;;  %v80_v34 = vadd.f32 %v70_v32, %v52_v26 }
  0x27   :  { %v81_v35 = vadd.f32 %v79_v33, %v53_v29 }
  0x29   :  { %v82_v36 = vadd.f32 %v81_v35, %v80_v34 }
  0x2b   :  { %84 = vst [vmem:[#allocation7] sm:$0xff] %v82_v36 }
  0x2c   :  { %95 = dma.vmem_to_hbm [thread:$0]  %s91_s1, 128, %s93_s23, [#allocation4]  }
  0x2d   :  { %192 = dma.done.wait [#allocation4], 128  }
  0x2e   :  { %193 = vsyncadd [#allocation4], 4294967168 }
  0x2f   :  { %100 = vsyncpa [#allocation3], 1 }
  0x30   :  { %101 = vsyncpa [#allocation6], 1 }
  0x31   :  { %102 = vsyncpa [#allocation4], 1 }

</bundles_post_ra>
